<compile_context>
chip_gen: v5e
topology: v5e:2x2
jax: 0.10.0
libtpu: 0.0.40
codegen_flags: <defaults>
</compile_context>

<pallas_src>
import functools

import jax
import jax.numpy as jnp
from jax import lax
from jax.experimental import pallas as pl
from jax.experimental.pallas import tpu as pltpu


def _round_up(x, m):
    return (x + m - 1) // m * m


def _detect_vmem_budget():
    """Best-effort per-core VMEM budget; conservative fallback fits v7x (64 MiB)."""
    try:
        cap = int(pltpu.get_tpu_info().vmem_capacity_bytes)
        if cap > 0:
            return int(cap * 0.85)
    except Exception:
        pass
    return 56 * 1024 * 1024


_VMEM_BUDGET = _detect_vmem_budget()


# ----------------------------------------------------------------------------
# Fused Conv3d(3x3x3, stride 1, pad 1) + bias + ReLU
# ----------------------------------------------------------------------------
def _conv3d_kernel(x_ref, w_ref, b_ref, o_ref, *, D, HW, plane, row_step,
                   taps_h, blk_d):
    """One whole sample per grid step.

    x_ref : (1, (D+2)*plane, Kc) bf16  depth/row-flattened, kw (and for conv1
                                       also kh) pre-shifted zero-padded input.
    w_ref : (3, taps_h, Kc, Cout) bf16 constant block index -> stays resident.
    b_ref : (1, Cout) f32
    o_ref : (1, D, HW, Cout) bf16

    For output voxel (d, i, j), tap (kd, kh) reads flattened row
        (d + kd) * plane + kh * row_step + (i * W + j)
    so each tap is ONE contiguous row slice feeding ONE MXU dot covering a
    whole block of `blk_d` output depth planes (M = (blk-1)*plane + HW rows).
    """
    for d0 in range(0, D, blk_d):
        blk = min(blk_d, D - d0)
        m = (blk - 1) * plane + HW            # rows covering blk output planes
        acc = None
        for kd in range(3):
            for kh in range(taps_h):
                start = (d0 + kd) * plane + kh * row_step
                lhs = x_ref[0, pl.ds(start, m), :]                # (m, Kc) bf16
                c = jnp.dot(lhs, w_ref[kd, kh],
                            preferred_element_type=jnp.float32)   # MXU, f32 acc
                acc = c if acc is None else acc + c               # value accum
        r = jnp.maximum(acc + b_ref[...], 0.0).astype(o_ref.dtype)
        # Valid-row extraction (drop the 2 padded H rows per plane, if any) and
        # a single store per output plane.
        for t in range(blk):
            o_ref[0, d0 + t] = r[t * plane:t * plane + HW, :]
        # TODO(synk): fuse the following 2x2 spatial max-pool into this epilogue
        # (acc is already in VMEM) to cut conv writeback + pool read ~4x.


def conv3d_relu(x, w, b):
    """Conv3d(k=3, pad=1, stride=1) + bias + ReLU.

    x: (N, D, H, W, Cin) bf16;  w: (Cout, Cin, 3, 3, 3) f32 (PyTorch layout);
    b: (Cout,) f32.  Returns (N, D, H, W, Cout) bf16.
    """
    N, D, H, W, Cin = x.shape
    Cout = w.shape[0]
    HW = H * W

    # Zero 'same' padding in D / H / W (only ~1x extra traffic; the old 3x
    # depth-tap re-read and 3x-of-3x read amplification are gone).
    xp = jnp.pad(x, ((0, 0), (1, 1), (1, 1), (1, 1), (0, 0)))

    fold_kh = (9 * Cin) <= 128   # conv1: fold kh AND kw into channels (K = 27)
    if fold_kh:
        parts = [xp[:, :, kh:kh + H, kw:kw + W, :]
                 for kh in range(3) for kw in range(3)]
        Kc, taps_h, plane, row_step = 9 * Cin, 1, HW, 0
        xflat = jnp.concatenate(parts, axis=-1).reshape(N, (D + 2) * plane, Kc)
        wm = jnp.transpose(w, (2, 3, 4, 1, 0)).reshape(3, 1, Kc, Cout)
    else:
        parts = [xp[:, :, :, kw:kw + W, :] for kw in range(3)]
        Kc, taps_h, plane, row_step = 3 * Cin, 3, (H + 2) * W, W
        xflat = jnp.concatenate(parts, axis=-1).reshape(N, (D + 2) * plane, Kc)
        wm = jnp.transpose(w, (2, 3, 4, 1, 0)).reshape(3, 3, Kc, Cout)
    wm = wm.astype(jnp.bfloat16)
    bm = b.reshape(1, Cout).astype(jnp.float32)

    # Batch blk_d output planes per dot so M is a few hundred rows while the
    # f32 accumulator stays near vreg-file size (register-friendly accumulation).
    blk_d = max(1, min(D, -(-512 // plane)))
    while blk_d > 1 and ((blk_d - 1) * plane + HW) * Cout * 4 > 512 * 1024:
        blk_d -= 1

    P = (D + 2) * plane

    # Per-layer VMEM budget from actual (lane/sublane padded) block sizes:
    # double-buffered in/out/weight blocks + accumulator temporaries + headroom.
    lane = 128
    in_bytes = _round_up(P, 8) * _round_up(Kc, lane) * 2
    w_bytes = 3 * taps_h * _round_up(Kc, 8) * _round_up(Cout, lane) * 2
    out_bytes = D * _round_up(HW, 8) * _round_up(Cout, lane) * 2
    acc_bytes = _round_up((blk_d - 1) * plane + HW, 8) * _round_up(Cout, lane) * 4
    need = 2 * (in_bytes + w_bytes + out_bytes) + 4 * acc_bytes + (8 << 20)
    vmem_limit = int(min(max(need, 16 << 20), _VMEM_BUDGET))
    # TODO(synk): on v7x, pipeline_mode=pl.Buffered(1) on the constant-index
    # weight spec would free ~14 MB for the 512->512 layers; left out to keep
    # the lowering path identical to the validated one.

    kern = functools.partial(_conv3d_kernel, D=D, HW=HW, plane=plane,
                             row_step=row_step, taps_h=taps_h, blk_d=blk_d)
    out = pl.pallas_call(
        kern,
        out_shape=jax.ShapeDtypeStruct((N, D, HW, Cout), jnp.bfloat16),
        grid=(N,),
        in_specs=[
            pl.BlockSpec((1, P, Kc), lambda n: (n, 0, 0)),
            # Constant block index -> full weight tensor stays resident in VMEM.
            pl.BlockSpec((3, taps_h, Kc, Cout), lambda n: (0, 0, 0, 0)),
            pl.BlockSpec((1, Cout), lambda n: (0, 0)),
        ],
        out_specs=pl.BlockSpec((1, D, HW, Cout), lambda n: (n, 0, 0, 0)),
        compiler_params=pltpu.CompilerParams(
            dimension_semantics=("parallel",),
            vmem_limit_bytes=vmem_limit,
        ),
    )(xflat, wm, bm)
    return out.reshape(N, D, H, W, Cout)


# ----------------------------------------------------------------------------
# MaxPool3d (stride == kernel, floor mode, -inf padding)
# ----------------------------------------------------------------------------
def _maxpool_kernel(x_ref, o_ref, *, kd, kh, kw):
    """x_ref: (1, kd, oH, kh, oW*kw, C)  ->  o_ref: (1, oH, oW, C).

    Channels stay lane-dense; the kw selection is a sublane-structured slice.
    """
    oH, oW, C = o_ref.shape[1], o_ref.shape[2], o_ref.shape[3]
    acc = None
    for a in range(kd):
        for b in range(kh):
            v = x_ref[0, a, :, b, :, :].reshape(oH, oW, kw, C)
            for c in range(kw):
                p = v[:, :, c, :]                       # (oH, oW, C)
                acc = p if acc is None else jnp.maximum(acc, p)
    o_ref[0] = acc


def maxpool3d(x, ksize, stride, pad):
    """MaxPool3d with stride == kernel (true for all C3D pools), floor mode."""
    assert ksize == stride
    N, D, H, W, C = x.shape
    kd, kh, kw = ksize
    sizes = [D, H, W]
    outs = []
    xp = x
    for ax in range(3):
        size, k, p = sizes[ax], ksize[ax], pad[ax]
        osz = (size + 2 * p - k) // k + 1
        needed = osz * k
        outs.append(osz)
        pad_right = max(0, needed - size - p)
        if p > 0 or pad_right > 0:
            cfg = [(0, 0)] * 5
            cfg[ax + 1] = (p, pad_right)
            xp = jnp.pad(xp, cfg, constant_values=-jnp.inf)
        if xp.shape[ax + 1] > needed:
            xp = lax.slice_in_dim(xp, 0, needed, axis=ax + 1)
    oD, oH, oW = outs

    # Row-major splits only -> free reshape, no windowed HBM copy.
    xr = xp.reshape(N * oD, kd, oH, kh, oW * kw, C)
    out = pl.pallas_call(
        functools.partial(_maxpool_kernel, kd=kd, kh=kh, kw=kw),
        out_shape=jax.ShapeDtypeStruct((N * oD, oH, oW, C), x.dtype),
        grid=(N * oD,),
        in_specs=[pl.BlockSpec((1, kd, oH, kh, oW * kw, C),
                               lambda i: (i, 0, 0, 0, 0, 0))],
        out_specs=pl.BlockSpec((1, oH, oW, C), lambda i: (i, 0, 0, 0)),
        compiler_params=pltpu.CompilerParams(dimension_semantics=("parallel",)),
    )(xr)
    return out.reshape(N, oD, oH, oW, C)


# ----------------------------------------------------------------------------
# C3D model (feature extractor -- matches the reference module's forward())
# ----------------------------------------------------------------------------
_CONV_CHANNELS = [(3, 64), (64, 128), (128, 256), (256, 256),
                  (256, 512), (512, 512), (512, 512), (512, 512)]


def init_c3d_params(key):
    params = []
    keys = jax.random.split(key, len(_CONV_CHANNELS))
    for k, (cin, cout) in zip(keys, _CONV_CHANNELS):
        fan_in = cin * 27
        w = jax.random.normal(k, (cout, cin, 3, 3, 3), jnp.float32) * jnp.sqrt(2.0 / fan_in)
        b = jnp.zeros((cout,), jnp.float32)  # kaiming weights, zero bias (synthetic)
        params.append((w, b))
    return params


@jax.jit
def c3d_forward(x_ncdhw, params):
    # Accept PyTorch NCDHW, compute channels-last in bf16 (MXU-native, f32 accum).
    x = jnp.transpose(x_ncdhw, (0, 2, 3, 4, 1)).astype(jnp.bfloat16)

    x = conv3d_relu(x, *params[0])
    x = maxpool3d(x, (1, 2, 2), (1, 2, 2), (0, 0, 0))

    x = conv3d_relu(x, *params[1])
    x = maxpool3d(x, (2, 2, 2), (2, 2, 2), (0, 0, 0))

    x = conv3d_relu(x, *params[2])
    x = conv3d_relu(x, *params[3])
    x = maxpool3d(x, (2, 2, 2), (2, 2, 2), (0, 0, 0))

    x = conv3d_relu(x, *params[4])
    x = conv3d_relu(x, *params[5])
    x = maxpool3d(x, (2, 2, 2), (2, 2, 2), (0, 0, 0))

    x = conv3d_relu(x, *params[6])
    x = conv3d_relu(x, *params[7])
    x = maxpool3d(x, (2, 2, 2), (2, 2, 2), (0, 1, 1))

    # PyTorch: x.view(N, -1) on NCDHW layout.
    x = jnp.transpose(x, (0, 4, 1, 2, 3))
    return x.reshape(x.shape[0], -1).astype(jnp.float32)


# TODO(synk): the `classifier` Sequential is defined in __init__ but never used
# by the reference forward(), so it is intentionally not implemented here.

if __name__ == "__main__":
    key = jax.random.PRNGKey(0)
    k_params, k_x, k_cx, k_cw = jax.random.split(key, 4)

    params = init_c3d_params(k_params)

    # Quick numeric sanity checks of the fused conv kernel (both tap layouts)
    # against lax.conv_general_dilated on the same bf16-cast operands.
    def conv_ref(x_bf16, w, b):
        xf = x_bf16.astype(jnp.float32)
        wf = jnp.transpose(w.astype(jnp.bfloat16).astype(jnp.float32), (2, 3, 4, 1, 0))
        out = lax.conv_general_dilated(
            xf, wf, window_strides=(1, 1, 1), padding=((1, 1),) * 3,
            dimension_numbers=("NDHWC", "DHWIO", "NDHWC"))
        return jnp.maximum(out + b.astype(jnp.float32), 0.0)

    xc = jax.random.normal(k_cx, (2, 4, 8, 8, 3), jnp.float32).astype(jnp.bfloat16)
    got = conv3d_relu(xc, *params[0]).astype(jnp.float32)
    want = conv_ref(xc, *params[0])
    assert bool(jnp.allclose(got, want, rtol=2e-2, atol=2e-2)), "conv (folded taps) mismatch"

    wc = jax.random.normal(k_cw, (32, 16, 3, 3, 3), jnp.float32) * 0.05
    bc = jnp.linspace(-0.1, 0.1, 32, dtype=jnp.float32)
    xc2 = jax.random.normal(k_cx, (1, 4, 6, 8, 16), jnp.float32).astype(jnp.bfloat16)
    got2 = conv3d_relu(xc2, wc, bc).astype(jnp.float32)
    want2 = conv_ref(xc2, wc, bc)
    assert bool(jnp.allclose(got2, want2, rtol=2e-2, atol=2e-2)), "conv (3x3 taps) mismatch"

    # Small input consistent with the module: N=2 clips, 3 channels, D=16, H=W=16.
    # (D survives 4 temporal halvings; H/W survive 5 spatial halvings thanks to
    #  the final pool's (1, 1) spatial padding.)
    x = jax.random.normal(k_x, (2, 3, 16, 16, 16), jnp.float32)

    out = c3d_forward(x, params)
    out = jax.block_until_ready(out)

    assert out.shape == (2, 512), out.shape
    assert bool(jnp.all(jnp.isfinite(out)))
    assert bool(jnp.all(out >= 0.0))  # last ops before flatten are ReLU + max-pool
    print("KERNEL_OK")
</pallas_src>

<mosaic_0001>
module attributes {stable_mosaic.version = 11 : i64} {
  func.func @_conv3d_kernel(%arg0: i32, %arg1: memref<1x384x27xbf16, #tpu.memory_space<vmem>>, %arg2: memref<3x1x27x64xbf16, #tpu.memory_space<vmem>>, %arg3: memref<1x64xf32, #tpu.memory_space<vmem>>, %arg4: memref<1x4x64x64xbf16, #tpu.memory_space<vmem>>) attributes {dimension_semantics = [#tpu.dimension_semantics<parallel>], iteration_bounds = array<i64: 2>, scalar_prefetch = 0 : i64, scratch_operands = 0 : i64, tpu.core_type = #tpu.core_type<tc>, window_params = [{transform_indices = @transform_0, window_bounds = array<i64: 1, 384, 27>}, {pipeline_mode = #tpu.pipeline_mode<synchronous>, transform_indices = @transform_1, window_bounds = array<i64: 3, 1, 27, 64>}, {pipeline_mode = #tpu.pipeline_mode<synchronous>, transform_indices = @transform_2, window_bounds = array<i64: 1, 64>}, {transform_indices = @transform_3, window_bounds = array<i64: 1, 4, 64, 64>}]} {
    %c0 = arith.constant 0 : index
    %c0_0 = arith.constant 0 : index
    %c0_1 = arith.constant 0 : index
    %0 = vector.load %arg1[%c0, %c0_0, %c0_1] : memref<1x384x27xbf16, #tpu.memory_space<vmem>>, vector<1x256x27xbf16>
    %1 = vector.shape_cast %0 : vector<1x256x27xbf16> to vector<256x27xbf16>
    %c0_2 = arith.constant 0 : index
    %c0_3 = arith.constant 0 : index
    %c0_4 = arith.constant 0 : index
    %c0_5 = arith.constant 0 : index
    %2 = vector.load %arg2[%c0_2, %c0_3, %c0_4, %c0_5] : memref<3x1x27x64xbf16, #tpu.memory_space<vmem>>, vector<1x1x27x64xbf16>
    %3 = vector.shape_cast %2 : vector<1x1x27x64xbf16> to vector<27x64xbf16>
    %cst = arith.constant dense<0.000000e+00> : vector<256x64xf32>
    %4 = tpu.matmul %1, %3, %cst {dimension_numbers = #tpu.dot_dimension_numbers<[1], [0], [0], [1], [0, 0, 1, 1], [], []>} : vector<256x27xbf16>, vector<27x64xbf16>, vector<256x64xf32> -> vector<256x64xf32>
    %c0_6 = arith.constant 0 : index
    %c64 = arith.constant 64 : index
    %c0_7 = arith.constant 0 : index
    %5 = vector.load %arg1[%c0_6, %c64, %c0_7] : memref<1x384x27xbf16, #tpu.memory_space<vmem>>, vector<1x256x27xbf16>
    %6 = vector.shape_cast %5 : vector<1x256x27xbf16> to vector<256x27xbf16>
    %c1 = arith.constant 1 : index
    %c0_8 = arith.constant 0 : index
    %c0_9 = arith.constant 0 : index
    %c0_10 = arith.constant 0 : index
    %7 = vector.load %arg2[%c1, %c0_8, %c0_9, %c0_10] : memref<3x1x27x64xbf16, #tpu.memory_space<vmem>>, vector<1x1x27x64xbf16>
    %8 = vector.shape_cast %7 : vector<1x1x27x64xbf16> to vector<27x64xbf16>
    %cst_11 = arith.constant dense<0.000000e+00> : vector<256x64xf32>
    %9 = tpu.matmul %6, %8, %cst_11 {dimension_numbers = #tpu.dot_dimension_numbers<[1], [0], [0], [1], [0, 0, 1, 1], [], []>} : vector<256x27xbf16>, vector<27x64xbf16>, vector<256x64xf32> -> vector<256x64xf32>
    %10 = arith.addf %4, %9 : vector<256x64xf32>
    %c0_12 = arith.constant 0 : index
    %c128 = arith.constant 128 : index
    %c0_13 = arith.constant 0 : index
    %11 = vector.load %arg1[%c0_12, %c128, %c0_13] : memref<1x384x27xbf16, #tpu.memory_space<vmem>>, vector<1x256x27xbf16>
    %12 = vector.shape_cast %11 : vector<1x256x27xbf16> to vector<256x27xbf16>
    %c2 = arith.constant 2 : index
    %c0_14 = arith.constant 0 : index
    %c0_15 = arith.constant 0 : index
    %c0_16 = arith.constant 0 : index
    %13 = vector.load %arg2[%c2, %c0_14, %c0_15, %c0_16] : memref<3x1x27x64xbf16, #tpu.memory_space<vmem>>, vector<1x1x27x64xbf16>
    %14 = vector.shape_cast %13 : vector<1x1x27x64xbf16> to vector<27x64xbf16>
    %cst_17 = arith.constant dense<0.000000e+00> : vector<256x64xf32>
    %15 = tpu.matmul %12, %14, %cst_17 {dimension_numbers = #tpu.dot_dimension_numbers<[1], [0], [0], [1], [0, 0, 1, 1], [], []>} : vector<256x27xbf16>, vector<27x64xbf16>, vector<256x64xf32> -> vector<256x64xf32>
    %16 = arith.addf %10, %15 : vector<256x64xf32>
    %c0_18 = arith.constant 0 : index
    %c0_19 = arith.constant 0 : index
    %17 = vector.load %arg3[%c0_18, %c0_19] : memref<1x64xf32, #tpu.memory_space<vmem>>, vector<1x64xf32>
    %18 = vector.broadcast %17 : vector<1x64xf32> to vector<256x64xf32>
    %19 = arith.addf %16, %18 : vector<256x64xf32>
    %cst_20 = arith.constant 0.000000e+00 : f32
    %20 = vector.broadcast %cst_20 : f32 to vector<256x64xf32>
    %21 = arith.maximumf %19, %20 : vector<256x64xf32>
    %22 = arith.truncf %21 : vector<256x64xf32> to vector<256x64xbf16>
    %23 = vector.extract_strided_slice %22 {offsets = [0, 0], sizes = [64, 64], strides = [1, 1]} : vector<256x64xbf16> to vector<64x64xbf16>
    %c0_21 = arith.constant 0 : index
    %c0_22 = arith.constant 0 : index
    %c0_23 = arith.constant 0 : index
    %c0_24 = arith.constant 0 : index
    %24 = vector.load %arg4[%c0_21, %c0_22, %c0_23, %c0_24] : memref<1x4x64x64xbf16, #tpu.memory_space<vmem>>, vector<1x1x64x64xbf16>
    %25 = vector.shape_cast %24 : vector<1x1x64x64xbf16> to vector<64x64xbf16>
    %26 = vector.shape_cast %23 : vector<64x64xbf16> to vector<1x1x64x64xbf16>
    tpu.vector_store %arg4[%c0_21, %c0_22, %c0_23, %c0_24], %26 {strides = array<i32>} : memref<1x4x64x64xbf16, #tpu.memory_space<vmem>>, vector<1x1x64x64xbf16>,
    %27 = vector.extract_strided_slice %22 {offsets = [64, 0], sizes = [64, 64], strides = [1, 1]} : vector<256x64xbf16> to vector<64x64xbf16>
    %c0_25 = arith.constant 0 : index
    %c1_26 = arith.constant 1 : index
    %c0_27 = arith.constant 0 : index
    %c0_28 = arith.constant 0 : index
    %28 = vector.load %arg4[%c0_25, %c1_26, %c0_27, %c0_28] : memref<1x4x64x64xbf16, #tpu.memory_space<vmem>>, vector<1x1x64x64xbf16>
    %29 = vector.shape_cast %28 : vector<1x1x64x64xbf16> to vector<64x64xbf16>
    %30 = vector.shape_cast %27 : vector<64x64xbf16> to vector<1x1x64x64xbf16>
    tpu.vector_store %arg4[%c0_25, %c1_26, %c0_27, %c0_28], %30 {strides = array<i32>} : memref<1x4x64x64xbf16, #tpu.memory_space<vmem>>, vector<1x1x64x64xbf16>,
    %31 = vector.extract_strided_slice %22 {offsets = [128, 0], sizes = [64, 64], strides = [1, 1]} : vector<256x64xbf16> to vector<64x64xbf16>
    %c0_29 = arith.constant 0 : index
    %c2_30 = arith.constant 2 : index
    %c0_31 = arith.constant 0 : index
    %c0_32 = arith.constant 0 : index
    %32 = vector.load %arg4[%c0_29, %c2_30, %c0_31, %c0_32] : memref<1x4x64x64xbf16, #tpu.memory_space<vmem>>, vector<1x1x64x64xbf16>
    %33 = vector.shape_cast %32 : vector<1x1x64x64xbf16> to vector<64x64xbf16>
    %34 = vector.shape_cast %31 : vector<64x64xbf16> to vector<1x1x64x64xbf16>
    tpu.vector_store %arg4[%c0_29, %c2_30, %c0_31, %c0_32], %34 {strides = array<i32>} : memref<1x4x64x64xbf16, #tpu.memory_space<vmem>>, vector<1x1x64x64xbf16>,
    %35 = vector.extract_strided_slice %22 {offsets = [192, 0], sizes = [64, 64], strides = [1, 1]} : vector<256x64xbf16> to vector<64x64xbf16>
    %c0_33 = arith.constant 0 : index
    %c3 = arith.constant 3 : index
    %c0_34 = arith.constant 0 : index
    %c0_35 = arith.constant 0 : index
    %36 = vector.load %arg4[%c0_33, %c3, %c0_34, %c0_35] : memref<1x4x64x64xbf16, #tpu.memory_space<vmem>>, vector<1x1x64x64xbf16>
    %37 = vector.shape_cast %36 : vector<1x1x64x64xbf16> to vector<64x64xbf16>
    %38 = vector.shape_cast %35 : vector<64x64xbf16> to vector<1x1x64x64xbf16>
    tpu.vector_store %arg4[%c0_33, %c3, %c0_34, %c0_35], %38 {strides = array<i32>} : memref<1x4x64x64xbf16, #tpu.memory_space<vmem>>, vector<1x1x64x64xbf16>,
    return
  }
  func.func @transform_0(%arg0: i32) -> (i32, i32, i32) {
    %c0_i32 = arith.constant 0 : i32
    %c0_i32_0 = arith.constant 0 : i32
    %c0_i32_1 = arith.constant 0 : i32
    return %arg0, %c0_i32, %c0_i32_0 : i32, i32, i32
  }
  func.func @transform_1(%arg0: i32) -> (i32, i32, i32, i32) {
    %c0_i32 = arith.constant 0 : i32
    %c0_i32_0 = arith.constant 0 : i32
    %c0_i32_1 = arith.constant 0 : i32
    %c0_i32_2 = arith.constant 0 : i32
    %c0_i32_3 = arith.constant 0 : i32
    return %c0_i32, %c0_i32_0, %c0_i32_1, %c0_i32_2 : i32, i32, i32, i32
  }
  func.func @transform_2(%arg0: i32) -> (i32, i32) {
    %c0_i32 = arith.constant 0 : i32
    %c0_i32_0 = arith.constant 0 : i32
    %c0_i32_1 = arith.constant 0 : i32
    return %c0_i32, %c0_i32_0 : i32, i32
  }
  func.func @transform_3(%arg0: i32) -> (i32, i32, i32, i32) {
    %c0_i32 = arith.constant 0 : i32
    %c0_i32_0 = arith.constant 0 : i32
    %c0_i32_1 = arith.constant 0 : i32
    %c0_i32_2 = arith.constant 0 : i32
    return %arg0, %c0_i32, %c0_i32_0, %c0_i32_1 : i32, i32, i32, i32
  }
}

</mosaic_0001>

<bundles_post_ra>
// kernel: tpu_custom_call.1
= control target key start
LH: loop header
LB: loop body
LE: loop exit
PB: predicated region body
PF: predicated region fallthrough
CT: control target
= control target key end

     0   :  { %8 = vsyncpa [#allocation3], 0  ;;  %s1913_s0 = inlined_call_operand.vmem [shape: bf16[2,384,27], index: 0, kind: input, shape index: {}]   ;;  %s1914_s1 = inlined_call_operand.vmem [shape: bf16[3,1,27,64], index: 1, kind: input, shape index: {}]   ;;  %s1915_s2 = inlined_call_operand.vmem [shape: f32[1,64], index: 2, kind: input, shape index: {}]   ;;  %s1916_s3 = inlined_call_operand.hbm [shape: bf16[2,4,64,64], index: 3, kind: output, shape index: {}]  }
   0x1   :  { %10 = vsyncpa [#allocation3 + $0x1], 0  ;;  %s1543_s12 = smov 0   ;;  %s1545_s13 = smov 0  }
   0x2   :  { %s1547_s14 = smov 0   ;;  %s1549_s15 = smov 0  }
   0x3 LB: > { %s1564_s16 = sadd.s32 4294967295, %s1518_s15   ;;  %s1104_s17 = sadd.s32 4294967294, %s1518_s15   ;;  %s1518_s15 = sphi %s1549_s15, %s1922_s15   ;;  %s1514_s14 = sphi %s1547_s14, %s1921_s14   ;;  %s1510_s13 = sphi %s1545_s13, %s1920_s13   ;;  %s1506_s12 = sphi %s1543_s12, %s1919_s12  }
   0x4   : > { %s1568_s18 = sadd.s32 1, %s1518_s15   ;;  %s91_s19 = sadd.s32 1, %s1514_s14 }
   0x5   : > { %s88_s20 = ssub.s32 %s1518_s15, %s1568_s18  ;;  %p101_p0 = scmp.ne.s32.totalorder %s1514_s14, %s1510_s13 }
   0x6   : > { %p89_p1 = scmp.eq.s32.totalorder %s88_s20, 0  ;;  %p102_p2 = scmp.eq.s32.totalorder %s1564_s16, 1 }
   0x7   : > { %p107_p3 = scmp.ne.s32.totalorder %s1510_s13, %s1506_s12  ;;  %p108_p4 = scmp.eq.s32.totalorder %s1104_s17, 1 }
   0x8   : > { %s1579_s21 = scalar_select %p89_p1, %s1514_s14, %s91_s19  }
   0x9   : > { %p1581_p5 = por %p102_p2, %p101_p0  ;;  %p1585_p6 = por %p108_p4, %p107_p3 }
   0xa   : > { %p1107_p7 = scmp.ge.s32.totalorder %s1518_s15, 1  ;;  %p140_p8 = scmp.lt.s32.totalorder %s1518_s15, 3 }
   0xc   : > { %p141_p9 = pnand %p1107_p7, %p140_p8 }
   0xd   : > { %p164_p10 = scmp.lt.s32.totalorder (!%p141_p9), %s1564_s16, 1  ;;  %s161_s4 = sand.u32 (!%p141_p9), 1, %s1510_s13  }
   0xe   : > { %144 = sbr.rel (%p141_p9) target bundleno = 362 (0x16a), region = 32  ;;  %s1108_s5 = sshll.u32 (!%p141_p9), %s161_s4, 7 }
   0xf   : > { %s1717_s6 = scalar_lea.vmem (!%p141_p9), [#allocation2], %s1108_s5  ;;  %s1405_s7 = sshll.u32 (!%p141_p9), %s1564_s16, 7 }
  0x10   : > { %s1038_s10 = scalar_lea.hbm (!%p141_p9), %s1916_s3, %s1405_s7  ;;  %s1027_s17 = scalar_lea.sflag (!%p141_p9), [#allocation3], %s161_s4 }
  0x11   : > { %s1041_s11 = sshll.u32 (!%p141_p9), %s1038_s10, 4  ;;  %s1476_s26 = scalar_lea.hbm (!%p141_p9), %s1916_s3, 256  ;;  %s1042_s11 = int_to_ptr.hbm [resolvable:$true] %s1041_s11 }
  0x12   : > { %s1470_s19 = sshra.s32 (!%p141_p9), %s1042_s11, 4  ;;  %s1471_s19 = int_to_ptr.hbm [resolvable:$true] %s1470_s19 }
  0x13   : > { %v1184_v0 = vld [vmem:[%s1914_s1 + $0x18] sm:$0xf]  ;;  %v1386_v1 = vld [vmem:[%s1914_s1 + $0x18] sm:$0x30]  ;;  %vm359_vm0 = vcmask 1044480   ;;  %vm360_vm1 = vcmask 1045504   ;;  %p1477_p0 = scmp.lt.s32.totalorder %s1471_s19, %s1916_s3 }
  0x14   : > { %v1185_v2 = vor.u32 %v1386_v1, %v1184_v0  ;;  %v1224_v3 = vld [vmem:[%s1914_s1 + $0x8] sm:$0xf]  ;;  %v1380_v4 = vld [vmem:[%s1914_s1 + $0x8] sm:$0x30]  ;;  %v1520_v5 = vmov 65535   ;;  %s165_s9 = scalar_select %p164_p10, %s1564_s16, 1 }
  0x15   : > { %v361_v6 = vsel %vm359_vm0, 4294967295, %v1520_v5  ;;  %v1225_v7 = vor.u32 %v1380_v4, %v1224_v3  ;;  %v1316_v8 = vld [vmem:[%s1914_s1 + $0x28] sm:$0xf]  ;;  %v1404_v9 = vld [vmem:[%s1914_s1 + $0x28] sm:$0x30]  ;;  %v1385_v15 = vld [vmem:[%s1914_s1 + $0x10] sm:$0xff] }
  0x16   : > { %v362_v10 = vsel %vm360_vm1, %v361_v6, 0  ;;  %v1317_v11 = vor.u32 %v1404_v9, %v1316_v8  ;;  %v1379_v16 = vld [vmem:[%s1914_s1] sm:$0xff]  ;;  %s1412_s25 = smul.u32 192, %s165_s9  ;;  %vm310_vm2 = vcmask 220160   ;;  %vm990_vm3 = vcmask 519168   ;;  %s1039_s16 = sshll.u32 %s1717_s6, 4  ;;  %s1040_s16 = int_to_ptr.vmem [resolvable:$true] %s1039_s16 }
  0x17   : > { %v364_v12 = vand.u32 %v1185_v2, %v362_v10  ;;  %v499_v13 = vand.u32 %v1225_v7, %v362_v10  ;;  %v1403_v17 = vld [vmem:[%s1914_s1 + $0x20] sm:$0xff]  ;;  %s1472_s20 = scalar_lea.hbm %s1471_s19, 128 }
  0x18   : > { %v767_v14 = vand.u32 %v1317_v11, %v362_v10  ;;  %s1623_s28 = scalar_lea.vmem %s1913_s0, %s1412_s25  ;;  %v1708_v52 = vld [vmem:[%s1915_s2] ss:$0 sm:$0xff]  ;;  %p1473_p11 = scmp.ne.s32.totalorder %s1471_s19, %s1472_s20 }
  0x19   : > { %372 = vmatpush.bf16.msra.mxu0 %v364_v12  ;;  %1406 = vmatpush.bf16.msra.mxu3 %v364_v12  ;;  %v1367_v18 = vld [vmem:[%s1623_s28 + $0x20] sm:$0xff]  ;;  %v1368_v22 = vld [vmem:[%s1623_s28 + $0x28] sm:$0xff]  ;;  %v1369_v26 = vld [vmem:[%s1623_s28 + $0x30] sm:$0xff]  ;;  %p1478_p1 = scmp.lt.s32.totalorder %s1476_s26, %s1472_s20 }
  0x1a   : > { %507 = vmatpush.bf16.msra.mxu1 %v499_v13  ;;  %775 = vmatpush.bf16.msra.mxu2 %v767_v14  ;;  %v1381_v19 = vld [vmem:[%s1623_s28 + $0x80] sm:$0xff]  ;;  %v1382_v23 = vld [vmem:[%s1623_s28 + $0x88] sm:$0xff]  ;;  %v1383_v27 = vld [vmem:[%s1623_s28 + $0x90] sm:$0xff]  ;;  %p1474_p12 = pnand %p1473_p11, %p1581_p5 }
  0x1b   : > { %v1363_v20 = vld [vmem:[%s1623_s28] sm:$0xff]  ;;  %v1364_v24 = vld [vmem:[%s1623_s28 + $0x8] sm:$0xff]  ;;  %v1365_v28 = vld [vmem:[%s1623_s28 + $0x10] sm:$0xff]  ;;  %p1479_p2 = por %p1478_p1, %p1477_p0 }
  0x1c   : > { %v1387_v21 = vld [vmem:[%s1623_s28 + $0x40] sm:$0xff]  ;;  %v1388_v25 = vld [vmem:[%s1623_s28 + $0x48] sm:$0xff]  ;;  %v1389_v29 = vld [vmem:[%s1623_s28 + $0x50] sm:$0xff]  ;;  %p1475_p13 = pneg %p1474_p12 }
  0x1d   : > { %373 = vmatpush.bf16.msra.mxu0 %v1385_v15  ;;  %1407 = vmatpush.bf16.msra.mxu3 %v1385_v15  ;;  %v1370_v30 = vld [vmem:[%s1623_s28 + $0x38] sm:$0xff]  ;;  %v1371_v34 = vld [vmem:[%s1623_s28 + $0x40] sm:$0xff]  ;;  %v1372_v37 = vld [vmem:[%s1623_s28 + $0x48] sm:$0xff] }
  0x1e   : > { %508 = vmatpush.bf16.msra.mxu1 %v1379_v16  ;;  %776 = vmatpush.bf16.msra.mxu2 %v1403_v17  ;;  %v1384_v31 = vld [vmem:[%s1623_s28 + $0x98] sm:$0xff]  ;;  %v1375_v35 = vld [vmem:[%s1623_s28 + $0x60] sm:$0xff]  ;;  %v1376_v38 = vld [vmem:[%s1623_s28 + $0x68] sm:$0xff]  ;;  %p1480_p3 = pnand %p1479_p2, %p1475_p13 }
  0x1f   : > { %v1366_v32 = vld [vmem:[%s1623_s28 + $0x18] sm:$0xff]  ;;  %v1391_v36 = vld [vmem:[%s1623_s28 + $0x60] sm:$0xff]  ;;  %v1392_v39 = vld [vmem:[%s1623_s28 + $0x68] sm:$0xff] }
  0x20   : > { %1186 = vmatmul.msk.bf16.vlgmr.msra.gmra.mxu0 %vm310_vm2, %v1367_v18  ;;  %1198 = vmatmul.msk.bf16.vlgmr.msra.gmra.mxu3 %vm310_vm2, %v1381_v19  ;;  %v1390_v33 = vld [vmem:[%s1623_s28 + $0x58] sm:$0xff]  ;;  %v1672_v40 = vld [vmem:[%s1623_s28 + $0x50] sm:$0xff]  ;;  %v1399_v46 = vld [vmem:[%s1623_s28 + $0xa0] sm:$0xff] }
  0x21   : > { %1408 = vmatpush.bf16.msrb.mxu3 %v499_v13  ;;  %1226 = vmatmul.msk.bf16.vlgmr.msra.gmra.mxu1 %vm310_vm2, %v1363_v20  ;;  %v1675_v41 = vld [vmem:[%s1623_s28 + $0x70] sm:$0xff]  ;;  %v1685_v43 = vld [vmem:[%s1623_s28 + $0x58] sm:$0xff]  ;;  %v1395_v48 = vld [vmem:[%s1623_s28 + $0x80] sm:$0xff] }
  0x22   : > { %1318 = vmatmul.msk.bf16.vlgmr.msra.gmra.mxu2 %vm310_vm2, %v1387_v21  ;;  %v1393_v42 = vld [vmem:[%s1623_s28 + $0x70] sm:$0xff]  ;;  %v1688_v44 = vld [vmem:[%s1623_s28 + $0x78] sm:$0xff]  ;;  %v1400_v63 = vld [vmem:[%s1623_s28 + $0xa8] sm:$0xff] }
  0x23   : > { %v1394_v45 = vld [vmem:[%s1623_s28 + $0x78] sm:$0xff]  ;;  %v1396_v2 = vld [vmem:[%s1623_s28 + $0x88] sm:$0xff]  ;;  %v1401_v19 = vld [vmem:[%s1623_s28 + $0xb0] sm:$0xff] }
  0x25   : > { %1409 = vmatpush.bf16.msrb.mxu3 %v1379_v16 }
  0x29   : > { %1410 = vmatpush.bf16.msra.mxu3 %v767_v14 }
  0x2d   : > { %1411 = vmatpush.bf16.msra.mxu3 %v1403_v17 }
  0x30   : > { %1187 = vmatmul.msk.bf16.gmra.mxu0 %vm310_vm2, %v1368_v22  ;;  %1199 = vmatmul.msk.bf16.gmra.mxu3 %vm310_vm2, %v1382_v23 }
  0x31   : > { %1227 = vmatmul.msk.bf16.gmra.mxu1 %vm310_vm2, %v1364_v24 }
  0x32   : > { %1319 = vmatmul.msk.bf16.gmra.mxu2 %vm310_vm2, %v1388_v25 }
  0x40   : > { %1188 = vmatmul.msk.bf16.gmra.mxu0 %vm310_vm2, %v1369_v26  ;;  %1200 = vmatmul.msk.bf16.gmra.mxu3 %vm310_vm2, %v1383_v27 }
  0x41   : > { %1228 = vmatmul.msk.bf16.gmra.mxu1 %vm310_vm2, %v1365_v28 }
  0x42   : > { %1320 = vmatmul.msk.bf16.gmra.mxu2 %vm310_vm2, %v1389_v29 }
  0x50   : > { %1189 = vmatmul.msk.bf16.gmra.mxu0 %vm310_vm2, %v1370_v30  ;;  %1201 = vmatmul.msk.bf16.gmra.mxu3 %vm310_vm2, %v1384_v31 }
  0x51   : > { %1229 = vmatmul.msk.bf16.gmra.mxu1 %vm310_vm2, %v1366_v32 }
  0x52   : > { %1321 = vmatmul.msk.bf16.gmra.mxu2 %vm310_vm2, %v1390_v33 }
  0x60   : > { %1190 = vmatmul.msk.bf16.gmra.mxu0 %vm310_vm2, %v1371_v34  ;;  %1238 = vmatmul.msk.bf16.vlgmr.msrb.gmra.mxu3 %vm310_vm2, %v1375_v35 }
  0x61   : > { %1230 = vmatmul.msk.bf16.gmra.mxu1 %vm310_vm2, %v1367_v18 }
  0x62   : > { %1322 = vmatmul.msk.bf16.gmra.mxu2 %vm310_vm2, %v1391_v36 }
  0x70   : > { %1191 = vmatmul.msk.bf16.gmra.mxu0 %vm310_vm2, %v1372_v37  ;;  %1239 = vmatmul.msk.bf16.gmra.mxu3 %vm310_vm2, %v1376_v38 }
  0x71   : > { %1231 = vmatmul.msk.bf16.gmra.mxu1 %vm310_vm2, %v1368_v22  ;;  %v1397_v22 = vld [vmem:[%s1623_s28 + $0x90] sm:$0xff] }
  0x72   : > { %1323 = vmatmul.msk.bf16.gmra.mxu2 %vm310_vm2, %v1392_v39  ;;  %v1402_v39 = vld [vmem:[%s1623_s28 + $0xb8] sm:$0xff] }
  0x80   : > { %1192 = vmatmul.msk.bf16.gmra.mxu0 %vm310_vm2, %v1672_v40  ;;  %1240 = vmatmul.msk.bf16.gmra.mxu3 %vm310_vm2, %v1675_v41 }
  0x81   : > { %1232 = vmatmul.msk.bf16.gmra.mxu1 %vm310_vm2, %v1369_v26 }
  0x82   : > { %1324 = vmatmul.msk.bf16.gmra.mxu2 %vm310_vm2, %v1393_v42  ;;  %v1398_v42 = vld [vmem:[%s1623_s28 + $0x98] sm:$0xff] }
  0x90   : > { %1193 = vmatmul.msk.bf16.gmra.mxu0 %vm310_vm2, %v1685_v43  ;;  %1241 = vmatmul.msk.bf16.gmra.mxu3 %vm310_vm2, %v1688_v44 }
  0x91   : > { %1233 = vmatmul.msk.bf16.gmra.mxu1 %vm310_vm2, %v1370_v30 }
  0x92   : > { %1325 = vmatmul.msk.bf16.gmra.mxu2 %vm310_vm2, %v1394_v45 }
  0x9d   : > { %v375_v47 = vpop.f32.mrf.mxu0 }
  0x9e   : > { %v510_v49 = vpop.f32.mrf.mxu1 }
  0x9f   : > { %v511_v50 = vadd.f32 %v510_v49, %v375_v47 }
  0xa0   : > { %1194 = vmatmul.msk.bf16.gmra.mxu0 %vm310_vm2, %v1375_v35  ;;  %1330 = vmatmul.msk.bf16.vlgmr.msra.gmra.mxu3 %vm310_vm2, %v1399_v46 }
  0xa1   : > { %1234 = vmatmul.msk.bf16.gmra.mxu1 %vm310_vm2, %v1371_v34 }
  0xa2   : > { %1326 = vmatmul.msk.bf16.gmra.mxu2 %vm310_vm2, %v1395_v48 }
  0xa3   : > { %v1703_v51 = vpop.f32.mrf.mxu3 }
  0xa5   : > { %v778_v53 = vpop.f32.mrf.mxu2  ;;  %v377_v55 = vpop.f32.mrf.mxu0 }
  0xa6   : > { %v858_v54 = vadd.f32 %v778_v53, %v511_v50  ;;  %v512_v56 = vpop.f32.mrf.mxu1 }
  0xa7   : > { %v513_v60 = vadd.f32 %v512_v56, %v377_v55 }
  0xa8   : > { %v894_v57 = vadd.f32 %v1708_v52, %v858_v54 }
  0xaa   : > { %v926_v58 = vmax.f32 %v894_v57, 0.0 }
  0xab   : > { %v1714_v61 = vpop.f32.mrf.mxu3 }
  0xac   : > { %v958_v59 = vpack.c.bf16 %v926_v58, %v926_v58 }
  0xad   : > { %v780_v62 = vpop.f32.mrf.mxu2  ;;  %v380_v1 = vpop.f32.mrf.mxu0 }
  0xae   : > { %991 = vst.msk [vmem:[%s1717_s6] sm:$0xf] %vm990_vm3, %v958_v59  ;;  %v859_v0 = vadd.f32 %v780_v62, %v513_v60  ;;  %v515_v3 = vpop.f32.mrf.mxu1 }
  0xaf   : > { %v516_v6 = vadd.f32 %v515_v3, %v380_v1 }
  0xb0   : > { %v895_v4 = vadd.f32 %v1708_v52, %v859_v0  ;;  %1195 = vmatmul.msk.bf16.gmra.mxu0 %vm310_vm2, %v1376_v38  ;;  %1331 = vmatmul.msk.bf16.gmra.mxu3 %vm310_vm2, %v1400_v63 }
  0xb1   : > { %1235 = vmatmul.msk.bf16.gmra.mxu1 %vm310_vm2, %v1372_v37 }
  0xb2   : > { %v927_v5 = vmax.f32 %v895_v4, 0.0  ;;  %1327 = vmatmul.msk.bf16.gmra.mxu2 %vm310_vm2, %v1396_v2 }
  0xb3   : > { %v1727_v8 = vpop.f32.mrf.mxu3 }
  0xb4   : > { %v959_v7 = vpack.c.bf16 %v927_v5, %v927_v5 }
  0xb5   : > { %v783_v9 = vpop.f32.mrf.mxu2  ;;  %v382_v11 = vpop.f32.mrf.mxu0 }
  0xb6   : > { %992 = vst.msk [vmem:[%s1717_s6 + $0x4] sm:$0xf] %vm990_vm3, %v959_v7  ;;  %v860_v10 = vadd.f32 %v783_v9, %v516_v6  ;;  %v517_v12 = vpop.f32.mrf.mxu1 }
  0xb7   : > { %v518_v16 = vadd.f32 %v517_v12, %v382_v11 }
  0xb8   : > { %v896_v13 = vadd.f32 %v1708_v52, %v860_v10 }
  0xba   : > { %v928_v14 = vmax.f32 %v896_v13, 0.0 }
  0xbb   : > { %v1732_v17 = vpop.f32.mrf.mxu3 }
  0xbc   : > { %v960_v15 = vpack.c.bf16 %v928_v14, %v928_v14 }
  0xbd   : > { %v785_v18 = vpop.f32.mrf.mxu2  ;;  %v385_v21 = vpop.f32.mrf.mxu0 }
  0xbe   : > { %993 = vst.msk [vmem:[%s1717_s6 + $0x8] sm:$0xf] %vm990_vm3, %v960_v15  ;;  %v861_v20 = vadd.f32 %v785_v18, %v518_v16  ;;  %v520_v23 = vpop.f32.mrf.mxu1 }
  0xbf   : > { %v521_v26 = vadd.f32 %v520_v23, %v385_v21 }
  0xc0   : > { %v897_v24 = vadd.f32 %v1708_v52, %v861_v20  ;;  %1196 = vmatmul.msk.bf16.gmra.mxu0 %vm310_vm2, %v1675_v41  ;;  %1332 = vmatmul.msk.bf16.gmra.mxu3 %vm310_vm2, %v1401_v19 }
  0xc1   : > { %1236 = vmatmul.msk.bf16.gmra.mxu1 %vm310_vm2, %v1672_v40 }
  0xc2   : > { %v929_v25 = vmax.f32 %v897_v24, 0.0  ;;  %1328 = vmatmul.msk.bf16.gmra.mxu2 %vm310_vm2, %v1397_v22 }
  0xc3   : > { %v1745_v28 = vpop.f32.mrf.mxu3 }
  0xc4   : > { %v961_v27 = vpack.c.bf16 %v929_v25, %v929_v25 }
  0xc5   : > { %v788_v29 = vpop.f32.mrf.mxu2  ;;  %v387_v31 = vpop.f32.mrf.mxu0 }
  0xc6   : > { %994 = vst.msk [vmem:[%s1717_s6 + $0xc] sm:$0xf] %vm990_vm3, %v961_v27  ;;  %v862_v30 = vadd.f32 %v788_v29, %v521_v26  ;;  %v522_v32 = vpop.f32.mrf.mxu1 }
  0xc7   : > { %v523_v36 = vadd.f32 %v522_v32, %v387_v31 }
  0xc8   : > { %v898_v33 = vadd.f32 %v1708_v52, %v862_v30 }
  0xca   : > { %v930_v34 = vmax.f32 %v898_v33, 0.0 }
  0xcb   : > { %v1750_v37 = vpop.f32.mrf.mxu3 }
  0xcc   : > { %v962_v35 = vpack.c.bf16 %v930_v34, %v930_v34 }
  0xcd   : > { %v790_v38 = vpop.f32.mrf.mxu2  ;;  %v390_v41 = vpop.f32.mrf.mxu0 }
  0xce   : > { %995 = vst.msk [vmem:[%s1717_s6 + $0x10] sm:$0xf] %vm990_vm3, %v962_v35  ;;  %v863_v40 = vadd.f32 %v790_v38, %v523_v36  ;;  %v525_v45 = vpop.f32.mrf.mxu1 }
  0xcf   : > { %v526_v48 = vadd.f32 %v525_v45, %v390_v41 }
  0xd0   : > { %v899_v46 = vadd.f32 %v1708_v52, %v863_v40  ;;  %1197 = vmatmul.msk.bf16.gmra.mxu0 %vm310_vm2, %v1688_v44  ;;  %1333 = vmatmul.msk.bf16.gmra.mxu3 %vm310_vm2, %v1402_v39 }
  0xd1   : > { %1237 = vmatmul.msk.bf16.gmra.mxu1 %vm310_vm2, %v1685_v43 }
  0xd2   : > { %v931_v47 = vmax.f32 %v899_v46, 0.0  ;;  %1329 = vmatmul.msk.bf16.gmra.mxu2 %vm310_vm2, %v1398_v42 }
  0xd3   : > { %v1763_v50 = vpop.f32.mrf.mxu3 }
  0xd4   : > { %v963_v49 = vpack.c.bf16 %v931_v47, %v931_v47 }
  0xd5   : > { %v793_v53 = vpop.f32.mrf.mxu2  ;;  %v392_v55 = vpop.f32.mrf.mxu0 }
  0xd6   : > { %996 = vst.msk [vmem:[%s1717_s6 + $0x14] sm:$0xf] %vm990_vm3, %v963_v49  ;;  %v864_v54 = vadd.f32 %v793_v53, %v526_v48  ;;  %v527_v56 = vpop.f32.mrf.mxu1 }
  0xd7   : > { %v528_v59 = vadd.f32 %v527_v56, %v392_v55 }
  0xd8   : > { %v900_v44 = vadd.f32 %v1708_v52, %v864_v54 }
  0xda   : > { %v932_v57 = vmax.f32 %v900_v44, 0.0 }
  0xdb   : > { %v1768_v60 = vpop.f32.mrf.mxu3 }
  0xdc   : > { %v964_v58 = vpack.c.bf16 %v932_v57, %v932_v57 }
  0xdd   : > { %v795_v43 = vpop.f32.mrf.mxu2  ;;  %v395_v63 = vpop.f32.mrf.mxu0 }
  0xde   : > { %997 = vst.msk [vmem:[%s1717_s6 + $0x18] sm:$0xf] %vm990_vm3, %v964_v58  ;;  %v865_v62 = vadd.f32 %v795_v43, %v528_v59  ;;  %v530_v0 = vpop.f32.mrf.mxu1 }
  0xdf   : > { %v531_v3 = vadd.f32 %v530_v0, %v395_v63 }
  0xe0   : > { %v901_v1 = vadd.f32 %v1708_v52, %v865_v62 }
  0xe2   : > { %v933_v2 = vmax.f32 %v901_v1, 0.0 }
  0xe3   : > { %v1773_v5 = vpop.f32.mrf.mxu3 }
  0xe4   : > { %v965_v4 = vpack.c.bf16 %v933_v2, %v933_v2 }
  0xe5   : > { %v798_v6 = vpop.f32.mrf.mxu2  ;;  %v397_v9 = vpop.f32.mrf.mxu0 }
  0xe6   : > { %998 = vst.msk [vmem:[%s1717_s6 + $0x1c] sm:$0xf] %vm990_vm3, %v965_v4  ;;  %v866_v7 = vadd.f32 %v798_v6, %v531_v3  ;;  %v532_v10 = vpop.f32.mrf.mxu1 }
  0xe7   : > { %v533_v14 = vadd.f32 %v532_v10, %v397_v9 }
  0xe8   : > { %v902_v11 = vadd.f32 %v1708_v52, %v866_v7 }
  0xea   : > { %v934_v12 = vmax.f32 %v902_v11, 0.0 }
  0xeb   : > { %v1778_v15 = vpop.f32.mrf.mxu3 }
  0xec   : > { %v966_v13 = vpack.c.bf16 %v934_v12, %v934_v12 }
  0xed   : > { %v800_v16 = vpop.f32.mrf.mxu2  ;;  %v400_v19 = vpop.f32.mrf.mxu0 }
  0xee   : > { %1334 = vst.msk [vmem:[%s1717_s6 + $0x20] sm:$0xf] %vm990_vm3, %v966_v13  ;;  %v867_v18 = vadd.f32 %v800_v16, %v533_v14  ;;  %v535_v20 = vpop.f32.mrf.mxu1 }
  0xef   : > { %v536_v23 = vadd.f32 %v535_v20, %v400_v19 }
  0xf0   : > { %v903_v21 = vadd.f32 %v1708_v52, %v867_v18 }
  0xf2   : > { %v935_v22 = vmax.f32 %v903_v21, 0.0 }
  0xf3   : > { %v1783_v25 = vpop.f32.mrf.mxu3 }
  0xf4   : > { %v967_v24 = vpack.c.bf16 %v935_v22, %v935_v22 }
  0xf5   : > { %v803_v26 = vpop.f32.mrf.mxu2  ;;  %v402_v29 = vpop.f32.mrf.mxu0 }
  0xf6   : > { %1335 = vst.msk [vmem:[%s1717_s6 + $0x24] sm:$0xf] %vm990_vm3, %v967_v24  ;;  %v868_v27 = vadd.f32 %v803_v26, %v536_v23  ;;  %v537_v30 = vpop.f32.mrf.mxu1  ;;  %v571_v26 = vadd.f32 %v1773_v5, %v1703_v51  ;;  %v573_v51 = vadd.f32 %v1778_v15, %v1714_v61 }
  0xf7   : > { %v538_v34 = vadd.f32 %v537_v30, %v402_v29 }
  0xf8   : > { %v904_v31 = vadd.f32 %v1708_v52, %v868_v27 }
  0xfa   : > { %v936_v32 = vmax.f32 %v904_v31, 0.0 }
  0xfb   : > { %v1788_v35 = vpop.f32.mrf.mxu3 }
  0xfc   : > { %v968_v33 = vpack.c.bf16 %v936_v32, %v936_v32 }
  0xfd   : > { %v805_v36 = vpop.f32.mrf.mxu2  ;;  %v405_v39 = vpop.f32.mrf.mxu0 }
  0xfe   : > { %1336 = vst.msk [vmem:[%s1717_s6 + $0x28] sm:$0xf] %vm990_vm3, %v968_v33  ;;  %v869_v38 = vadd.f32 %v805_v36, %v538_v34  ;;  %v540_v40 = vpop.f32.mrf.mxu1 }
  0xff   : > { %v541_v45 = vadd.f32 %v540_v40, %v405_v39 }
 0x100   : > { %v905_v41 = vadd.f32 %v1708_v52, %v869_v38 }
 0x102   : > { %v937_v42 = vmax.f32 %v905_v41, 0.0 }
 0x103   : > { %v1793_v47 = vpop.f32.mrf.mxu3 }
 0x104   : > { %v969_v46 = vpack.c.bf16 %v937_v42, %v937_v42 }
 0x105   : > { %v808_v48 = vpop.f32.mrf.mxu2  ;;  %v407_v53 = vpop.f32.mrf.mxu0 }
 0x106   : > { %1337 = vst.msk [vmem:[%s1717_s6 + $0x2c] sm:$0xf] %vm990_vm3, %v969_v46  ;;  %v870_v49 = vadd.f32 %v808_v48, %v541_v45  ;;  %v542_v54 = vpop.f32.mrf.mxu1 }
 0x107   : > { %v543_v57 = vadd.f32 %v542_v54, %v407_v53 }
 0x108   : > { %v906_v55 = vadd.f32 %v1708_v52, %v870_v49 }
 0x10a   : > { %v938_v56 = vmax.f32 %v906_v55, 0.0 }
 0x10b   : > { %v1798_v58 = vpop.f32.mrf.mxu3 }
 0x10c   : > { %v970_v44 = vpack.c.bf16 %v938_v56, %v938_v56 }
 0x10d   : > { %v810_v59 = vpop.f32.mrf.mxu2  ;;  %v410_v62 = vpop.f32.mrf.mxu0 }
 0x10e   : > { %1338 = vst.msk [vmem:[%s1717_s6 + $0x30] sm:$0xf] %vm990_vm3, %v970_v44  ;;  %v871_v43 = vadd.f32 %v810_v59, %v543_v57  ;;  %v545_v63 = vpop.f32.mrf.mxu1  ;;  %v576_v57 = vadd.f32 %v1783_v25, %v1727_v8  ;;  %v578_v25 = vadd.f32 %v1788_v35, %v1732_v17 }
 0x10f   : > { %v546_v2 = vadd.f32 %v545_v63, %v410_v62 }
 0x110   : > { %v907_v0 = vadd.f32 %v1708_v52, %v871_v43 }
 0x112   : > { %v939_v1 = vmax.f32 %v907_v0, 0.0 }
 0x113   : > { %v1803_v4 = vpop.f32.mrf.mxu3 }
 0x114   : > { %v971_v3 = vpack.c.bf16 %v939_v1, %v939_v1 }
 0x115   : > { %v813_v6 = vpop.f32.mrf.mxu2  ;;  %v412_v9 = vpop.f32.mrf.mxu0 }
 0x116   : > { %1339 = vst.msk [vmem:[%s1717_s6 + $0x34] sm:$0xf] %vm990_vm3, %v971_v3  ;;  %v872_v7 = vadd.f32 %v813_v6, %v546_v2  ;;  %v547_v10 = vpop.f32.mrf.mxu1 }
 0x117   : > { %v548_v14 = vadd.f32 %v547_v10, %v412_v9 }
 0x118   : > { %v908_v11 = vadd.f32 %v1708_v52, %v872_v7 }
 0x11a   : > { %v940_v12 = vmax.f32 %v908_v11, 0.0 }
 0x11b   : > { %v1808_v16 = vpop.f32.mrf.mxu3 }
 0x11c   : > { %v972_v13 = vpack.c.bf16 %v940_v12, %v940_v12 }
 0x11d   : > { %v815_v18 = vpop.f32.mrf.mxu2  ;;  %v415_v20 = vpop.f32.mrf.mxu0 }
 0x11e   : > { %1340 = vst.msk [vmem:[%s1717_s6 + $0x38] sm:$0xf] %vm990_vm3, %v972_v13  ;;  %v873_v19 = vadd.f32 %v815_v18, %v548_v14  ;;  %v550_v21 = vpop.f32.mrf.mxu1 }
 0x11f   : > { %v551_v24 = vadd.f32 %v550_v21, %v415_v20 }
 0x120   : > { %v909_v22 = vadd.f32 %v1708_v52, %v873_v19 }
 0x122   : > { %v941_v23 = vmax.f32 %v909_v22, 0.0 }
 0x123   : > { %v838_v29 = vpop.f32.mrf.mxu3 }
 0x124   : > { %v973_v27 = vpack.c.bf16 %v941_v23, %v941_v23  ;;  %v882_v31 = vadd.f32 %v838_v29, %v571_v26  ;;  %v581_v26 = vadd.f32 %v1793_v47, %v1745_v28  ;;  %v583_v47 = vadd.f32 %v1798_v58, %v1750_v37 }
 0x125   : > { %v818_v30 = vpop.f32.mrf.mxu2  ;;  %v417_v33 = vpop.f32.mrf.mxu0 }
 0x126   : > { %1341 = vst.msk [vmem:[%s1717_s6 + $0x3c] sm:$0xf] %vm990_vm3, %v973_v27  ;;  %v874_v32 = vadd.f32 %v818_v30, %v551_v24  ;;  %v918_v34 = vadd.f32 %v1708_v52, %v882_v31  ;;  %v552_v36 = vpop.f32.mrf.mxu1 }
 0x127   : > { %v553_v42 = vadd.f32 %v552_v36, %v417_v33 }
 0x128   : > { %v910_v38 = vadd.f32 %v1708_v52, %v874_v32  ;;  %v950_v39 = vmax.f32 %v918_v34, 0.0 }
 0x12a   : > { %v942_v40 = vmax.f32 %v910_v38, 0.0  ;;  %v982_v5 = vpack.c.bf16 %v950_v39, %v950_v39 }
 0x12b   : > { %v840_v45 = vpop.f32.mrf.mxu3 }
 0x12c   : > { %v974_v41 = vpack.c.bf16 %v942_v40, %v942_v40  ;;  %1350 = vst.msk [vmem:[%s1717_s6 + $0x60] sm:$0xf] %vm990_vm3, %v982_v5  ;;  %v883_v48 = vadd.f32 %v840_v45, %v573_v51 }
 0x12d   : > { %v820_v46 = vpop.f32.mrf.mxu2  ;;  %v420_v53 = vpop.f32.mrf.mxu0 }
 0x12e   : > { %1342 = vst.msk [vmem:[%s1717_s6 + $0x40] sm:$0xf] %vm990_vm3, %v974_v41  ;;  %v875_v49 = vadd.f32 %v820_v46, %v553_v42  ;;  %v919_v54 = vadd.f32 %v1708_v52, %v883_v48  ;;  %v555_v55 = vpop.f32.mrf.mxu1 }
 0x12f   : > { %v556_v44 = vadd.f32 %v555_v55, %v420_v53 }
 0x130   : > { %v911_v56 = vadd.f32 %v1708_v52, %v875_v49  ;;  %v951_v61 = vmax.f32 %v919_v54, 0.0 }
 0x132   : > { %v943_v15 = vmax.f32 %v911_v56, 0.0  ;;  %v983_v59 = vpack.c.bf16 %v951_v61, %v951_v61  ;;  %v586_v61 = vadd.f32 %v1803_v4, %v1763_v50  ;;  %v588_v4 = vadd.f32 %v1808_v16, %v1768_v60 }
 0x133   : > { %v843_v62 = vpop.f32.mrf.mxu3 }
 0x134   : > { %v975_v43 = vpack.c.bf16 %v943_v15, %v943_v15  ;;  %1351 = vst.msk [vmem:[%s1717_s6 + $0x64] sm:$0xf] %vm990_vm3, %v983_v59  ;;  %v884_v0 = vadd.f32 %v843_v62, %v576_v57 }
 0x135   : > { %v823_v63 = vpop.f32.mrf.mxu2  ;;  %v422_v2 = vpop.f32.mrf.mxu0 }
 0x136   : > { %1343 = vst.msk [vmem:[%s1717_s6 + $0x44] sm:$0xf] %vm990_vm3, %v975_v43  ;;  %v876_v1 = vadd.f32 %v823_v63, %v556_v44  ;;  %v920_v3 = vadd.f32 %v1708_v52, %v884_v0  ;;  %v557_v6 = vpop.f32.mrf.mxu1 }
 0x137   : > { %v558_v12 = vadd.f32 %v557_v6, %v422_v2 }
 0x138   : > { %v912_v7 = vadd.f32 %v1708_v52, %v876_v1  ;;  %v952_v9 = vmax.f32 %v920_v3, 0.0 }
 0x13a   : > { %v944_v8 = vmax.f32 %v912_v7, 0.0  ;;  %v984_v10 = vpack.c.bf16 %v952_v9, %v952_v9 }
 0x13b   : > { %v845_v13 = vpop.f32.mrf.mxu3 }
 0x13c   : > { %v976_v11 = vpack.c.bf16 %v944_v8, %v944_v8  ;;  %1352 = vst.msk [vmem:[%s1717_s6 + $0x68] sm:$0xf] %vm990_vm3, %v984_v10  ;;  %v885_v18 = vadd.f32 %v845_v13, %v578_v25 }
 0x13d   : > { %v825_v14 = vpop.f32.mrf.mxu2  ;;  %v425_v20 = vpop.f32.mrf.mxu0 }
 0x13e   : > { %1344 = vst.msk [vmem:[%s1717_s6 + $0x48] sm:$0xf] %vm990_vm3, %v976_v11  ;;  %v877_v19 = vadd.f32 %v825_v14, %v558_v12  ;;  %v921_v21 = vadd.f32 %v1708_v52, %v885_v18  ;;  %v560_v22 = vpop.f32.mrf.mxu1 }
 0x13f   : > { %v561_v24 = vadd.f32 %v560_v22, %v425_v20 }
 0x140   : > { %v913_v23 = vadd.f32 %v1708_v52, %v877_v19  ;;  %v953_v17 = vmax.f32 %v921_v21, 0.0 }
 0x142   : > { %v945_v35 = vmax.f32 %v913_v23, 0.0  ;;  %v985_v27 = vpack.c.bf16 %v953_v17, %v953_v17 }
 0x143   : > { %v848_v30 = vpop.f32.mrf.mxu3 }
 0x144   : > { %v977_v29 = vpack.c.bf16 %v945_v35, %v945_v35  ;;  %1353 = vst.msk [vmem:[%s1717_s6 + $0x6c] sm:$0xf] %vm990_vm3, %v985_v27  ;;  %v886_v32 = vadd.f32 %v848_v30, %v581_v26 }
 0x145   : > { %v828_v31 = vpop.f32.mrf.mxu2  ;;  %v427_v34 = vpop.f32.mrf.mxu0 }
 0x146   : > { %1345 = vst.msk [vmem:[%s1717_s6 + $0x4c] sm:$0xf] %vm990_vm3, %v977_v29  ;;  %v878_v33 = vadd.f32 %v828_v31, %v561_v24  ;;  %v922_v36 = vadd.f32 %v1708_v52, %v886_v32  ;;  %v562_v38 = vpop.f32.mrf.mxu1 }
 0x147   : > { %v563_v41 = vadd.f32 %v562_v38, %v427_v34 }
 0x148   : > { %v914_v39 = vadd.f32 %v1708_v52, %v878_v33  ;;  %v954_v40 = vmax.f32 %v922_v36, 0.0 }
 0x14a   : > { %v946_v28 = vmax.f32 %v914_v39, 0.0  ;;  %v986_v51 = vpack.c.bf16 %v954_v40, %v954_v40 }
 0x14b   : > { %v850_v42 = vpop.f32.mrf.mxu3 }
 0x14c   : > { %v978_v5 = vpack.c.bf16 %v946_v28, %v946_v28  ;;  %1354 = vst.msk [vmem:[%s1717_s6 + $0x70] sm:$0xf] %vm990_vm3, %v986_v51  ;;  %v887_v46 = vadd.f32 %v850_v42, %v583_v47 }
 0x14d   : > { %v830_v45 = vpop.f32.mrf.mxu2  ;;  %v430_v53 = vpop.f32.mrf.mxu0 }
 0x14e   : > { %1346 = vst.msk [vmem:[%s1717_s6 + $0x50] sm:$0xf] %vm990_vm3, %v978_v5  ;;  %v879_v48 = vadd.f32 %v830_v45, %v563_v41  ;;  %v923_v49 = vadd.f32 %v1708_v52, %v887_v46  ;;  %v565_v54 = vpop.f32.mrf.mxu1 }
 0x14f   : > { %v566_v56 = vadd.f32 %v565_v54, %v430_v53 }
 0x150   : > { %v915_v55 = vadd.f32 %v1708_v52, %v879_v48  ;;  %v955_v37 = vmax.f32 %v923_v49, 0.0 }
 0x152   : > { %v947_v58 = vmax.f32 %v915_v55, 0.0  ;;  %v987_v15 = vpack.c.bf16 %v955_v37, %v955_v37 }
 0x153   : > { %v853_v57 = vpop.f32.mrf.mxu3 }
 0x154   : > { %v979_v44 = vpack.c.bf16 %v947_v58, %v947_v58  ;;  %1355 = vst.msk [vmem:[%s1717_s6 + $0x74] sm:$0xf] %vm990_vm3, %v987_v15  ;;  %v888_v43 = vadd.f32 %v853_v57, %v586_v61 }
 0x155   : > { %v833_v59 = vpop.f32.mrf.mxu2  ;;  %v432_v2 = vpop.f32.mrf.mxu0 }
 0x156   : > { %1347 = vst.msk [vmem:[%s1717_s6 + $0x54] sm:$0xf] %vm990_vm3, %v979_v44  ;;  %v880_v62 = vadd.f32 %v833_v59, %v566_v56  ;;  %v924_v63 = vadd.f32 %v1708_v52, %v888_v43  ;;  %v567_v3 = vpop.f32.mrf.mxu1 }
 0x157   : > { %v568_v9 = vadd.f32 %v567_v3, %v432_v2 }
 0x158   : > { %v916_v0 = vadd.f32 %v1708_v52, %v880_v62  ;;  %v956_v1 = vmax.f32 %v924_v63, 0.0 }
 0x15a   : > { %v948_v50 = vmax.f32 %v916_v0, 0.0  ;;  %v988_v6 = vpack.c.bf16 %v956_v1, %v956_v1 }
 0x15b   : > { %v855_v8 = vpop.f32.mrf.mxu3 }
 0x15c   : > { %v980_v7 = vpack.c.bf16 %v948_v50, %v948_v50  ;;  %1356 = vst.msk [vmem:[%s1717_s6 + $0x78] sm:$0xf] %vm990_vm3, %v988_v6  ;;  %v889_v10 = vadd.f32 %v855_v8, %v588_v4 }
 0x15d   : > { %v835_v25 = vpop.f32.mrf.mxu2 }
 0x15e   : > { %1348 = vst.msk [vmem:[%s1717_s6 + $0x58] sm:$0xf] %vm990_vm3, %v980_v7  ;;  %v881_v11 = vadd.f32 %v835_v25, %v568_v9  ;;  %v925_v60 = vadd.f32 %v1708_v52, %v889_v10 }
 0x160   : > { %v917_v16 = vadd.f32 %v1708_v52, %v881_v11  ;;  %v957_v12 = vmax.f32 %v925_v60, 0.0 }
 0x162   : > { %v949_v13 = vmax.f32 %v917_v16, 0.0  ;;  %v989_v14 = vpack.c.bf16 %v957_v12, %v957_v12 }
 0x164   : > { %v981_v18 = vpack.c.bf16 %v949_v13, %v949_v13  ;;  %1357 = vst.msk [vmem:[%s1717_s6 + $0x7c] sm:$0xf] %vm990_vm3, %v989_v14 }
 0x166   : > { %1349 = vst.msk [vmem:[%s1717_s6 + $0x5c] sm:$0xf] %vm990_vm3, %v981_v18 }
 0x167   : > { %1483 = shalt.err (!%p1480_p3)
}
 0x168   : > { %s1521_s29 = smov 64   ;;  %s1522_s30 = smov 4  }
 0x169   : > { %1413 = dma.vmem_to_hbm [thread:$0]  (%p1581_p5), %s1040_s16, 2048, %s1042_s11, %s1027_s17, %s1521_s29, %s1521_s29, %s1522_s30  }
 0x16a PF: > { %p1419_p4 = scmp.ge.s32.totalorder %s1518_s15, 2  ;;  %s1056_s4 = sand.u32 1, %s1506_s12  }
 0x16b   : > { %s1057_s5 = scalar_lea.sflag [#allocation3], %s1056_s4 }
 0x16c   : > { %p1416_p7 = pnand %p1419_p4, %p1585_p6 }
 0x16e   : > { %p1417_p8 = pneg %p1416_p7 }
 0x170   : > { %1501 = dma.done.wait (%p1417_p8), %s1057_s5, 2048  }
 0x171   : > { %1503 = vsyncadd (%p1417_p8), %s1057_s5, 4294965248  ;;  %p13_p9 = scmp.ge.s32.totalorder %s1568_s18, 4   ;;  %s1919_s12 = smov %s1510_s13 }
 0x172   : > { %s1920_s13 = smov %s1514_s14  ;;  %s1921_s14 = smov %s1579_s21 }
 0x173   : > { %s1922_s15 = smov %s1568_s18  ;;  %15 = sbr.rel (!%p13_p9) target bundleno = 3 (0x3), region = 72 }
 0x178   :  { %1063 = vsyncpa [#allocation3], 1 }
 0x179   :  { %1065 = vsyncpa [#allocation3 + $0x1], 1 }

</bundles_post_ra>
